<compile_context>
chip_gen: v7x
topology: tpu7x:2x2x1
jax: 0.10.0
libtpu: 0.0.40
codegen_flags: <defaults>
</compile_context>

<pallas_src>
import functools

import jax
import jax.numpy as jnp
from jax import lax
from jax.experimental import pallas as pl
from jax.experimental.pallas import tpu as pltpu


def _tv_kernel(x_ref, sums_ref, *, W, HW, N, cb, ragged):
    # x_ref:    (cb, HW) slab of cb flattened (batch*channel) images, VMEM,
    #           kept in the input dtype (bf16 stays bf16 across the DMA).
    # sums_ref: (1, 2) SMEM partial-sum tile [h_tv, w_tv] for this grid step.
    x = x_ref[...]                                      # (cb, HW), native dtype

    # Row-major flattening: flat[r*W + c] = img[r, c], hence
    #   h-diff: flat[i+W] - flat[i], i in [0, HW-W)   -> (H-1)*W valid diffs
    #   w-diff: flat[i+1] - flat[i], i in [0, HW-1),  valid iff (i % W) != W-1
    hd = (x[:, W:] - x[:, : HW - W]).astype(jnp.float32)
    wd = (x[:, 1:] - x[:, : HW - 1]).astype(jnp.float32)
    hsq = hd * hd
    wsq = wd * wd

    col = lax.broadcasted_iota(jnp.int32, wsq.shape, 1)
    w_mask = (col % W) != (W - 1)                       # drop row-wrap diffs

    if ragged:
        # The last block hangs past N: rows with index >= N hold unspecified
        # data, so mask them out (jnp.where is NaN/Inf-safe).
        base = pl.program_id(0) * cb
        h_valid = (base + lax.broadcasted_iota(jnp.int32, hsq.shape, 0)) < N
        w_valid = ((base + lax.broadcasted_iota(jnp.int32, wsq.shape, 0)) < N) & w_mask
        sums_ref[0, 0] = jnp.sum(jnp.where(h_valid, hsq, 0.0))
        sums_ref[0, 1] = jnp.sum(jnp.where(w_valid, wsq, 0.0))
    else:
        sums_ref[0, 0] = jnp.sum(hsq)
        sums_ref[0, 1] = jnp.sum(jnp.where(w_mask, wsq, 0.0))


def tv_loss(x, tv_loss_weight=1.0):
    """Total-variation loss, matching the PyTorch TVLoss.forward semantics.

    x: (B, C, H, W) array.  Returns a float32 scalar.
    """
    B, C, H, W = x.shape
    N = B * C
    HW = H * W
    itemsize = jnp.dtype(x.dtype).itemsize

    # Contiguous row-major reshape: one lane-dense row per (batch, channel)
    # image.  No HBM copy is materialized for this.
    xr = x.reshape(N, HW)

    # Generation-aware VMEM budget (v5e/v6e: 128 MiB, v7x: 64 MiB per TC).
    try:
        vmem_cap = int(pltpu.get_tpu_info().vmem_capacity_bytes)
    except Exception:
        vmem_cap = 64 << 20  # conservative fallback (v7x per-TC)
    budget = int(vmem_cap * 0.55)

    # Per-image in-kernel footprint: 2 pipelined input buffers (native dtype)
    # + ~3 f32 temporaries (diffs + squares).  Derive cb from the budget.
    per_img = HW * (2 * itemsize + 3 * 4)
    cb = max(1, budget // per_img)

    if cb >= N:
        cb = N
    else:
        # Second-to-last block dim must be a multiple of 8 (sublane) unless
        # it equals the full array extent.
        cb = max(8, (cb // 8) * 8)
    if N >= 16:
        # Keep >= 2 balanced grid steps so a v7x megacore can split the
        # "parallel" axis across both TensorCores.
        half_up = (((N + 1) // 2) + 7) // 8 * 8
        cb = min(cb, half_up)
    if cb >= N:
        cb = N

    nb = pl.cdiv(N, cb)
    ragged = (nb * cb != N)  # tail rows are masked in-kernel; no jnp.pad copy

    block_in = cb * HW * itemsize
    block_f32 = cb * HW * 4
    vmem_limit = 2 * block_in + 4 * block_f32 + (2 << 20)
    vmem_limit = int(min(max(vmem_limit, 32 << 20), int(vmem_cap * 0.85)))

    cost = pl.CostEstimate(
        flops=6 * N * HW,
        transcendentals=0,
        bytes_accessed=N * HW * itemsize + nb * 2 * 4,  # actual (unpadded) traffic
    )

    kernel = functools.partial(_tv_kernel, W=W, HW=HW, N=N, cb=cb, ragged=ragged)

    sums = pl.pallas_call(
        kernel,
        out_shape=jax.ShapeDtypeStruct((nb, 2), jnp.float32),
        grid_spec=pltpu.PrefetchScalarGridSpec(
            num_scalar_prefetch=0,
            grid=(nb,),
            in_specs=[pl.BlockSpec((cb, HW), lambda i: (i, 0))],
            out_specs=pl.BlockSpec(
                (1, 2), lambda i: (i, 0), memory_space=pltpu.MemorySpace.SMEM
            ),
        ),
        compiler_params=pltpu.CompilerParams(
            dimension_semantics=("parallel",),
            vmem_limit_bytes=vmem_limit,
        ),
        cost_estimate=cost,
    )(xr)

    h_tv = jnp.sum(sums[:, 0])
    w_tv = jnp.sum(sums[:, 1])

    # Normalization matches the provided PyTorch module (no C factor).
    count_h = (H - 1) * W
    count_w = H * (W - 1)

    return (
        jnp.float32(tv_loss_weight)
        * 2.0
        * (h_tv / count_h + w_tv / count_w)
        / B
    )


def tv_loss_ref(x, tv_loss_weight=1.0):
    # Pure-JAX reference mirroring the PyTorch forward exactly.
    B, C, H, W = x.shape
    count_h = (H - 1) * W
    count_w = H * (W - 1)
    xf = x.astype(jnp.float32)
    h_tv = jnp.sum((xf[:, :, 1:, :] - xf[:, :, : H - 1, :]) ** 2)
    w_tv = jnp.sum((xf[:, :, :, 1:] - xf[:, :, :, : W - 1]) ** 2)
    return tv_loss_weight * 2.0 * (h_tv / count_h + w_tv / count_w) / B


if __name__ == "__main__":
    key = jax.random.PRNGKey(0)
    x = jax.random.normal(key, (2, 4, 16, 16), dtype=jnp.float32)

    out = tv_loss(x, tv_loss_weight=1.0)
    out = jax.block_until_ready(out)

    ref = tv_loss_ref(x, tv_loss_weight=1.0)
    assert jnp.allclose(out, ref, rtol=1e-5, atol=1e-5), (out, ref)

    print("KERNEL_OK")
</pallas_src>

<mosaic_0001>
module attributes {stable_mosaic.version = 11 : i64} {
  func.func @_tv_kernel(%arg0: i32, %arg1: memref<8x256xf32, #tpu.memory_space<vmem>>, %arg2: memref<1x2xf32, #tpu.memory_space<smem>>) attributes {dimension_semantics = [#tpu.dimension_semantics<parallel>], iteration_bounds = array<i64: 1>, scalar_prefetch = 0 : i64, scratch_operands = 0 : i64, tpu.core_type = #tpu.core_type<tc>, window_params = [{transform_indices = @transform_0, window_bounds = array<i64: 8, 256>}, {transform_indices = @transform_1, window_bounds = array<i64: 1, 2>}]} {
    %c0 = arith.constant 0 : index
    %c0_0 = arith.constant 0 : index
    %0 = vector.load %arg1[%c0, %c0_0] : memref<8x256xf32, #tpu.memory_space<vmem>>, vector<8x256xf32>
    %1 = vector.extract_strided_slice %0 {offsets = [0, 16], sizes = [8, 240], strides = [1, 1]} : vector<8x256xf32> to vector<8x240xf32>
    %2 = vector.extract_strided_slice %0 {offsets = [0, 0], sizes = [8, 240], strides = [1, 1]} : vector<8x256xf32> to vector<8x240xf32>
    %3 = arith.subf %1, %2 : vector<8x240xf32>
    %4 = vector.extract_strided_slice %0 {offsets = [0, 1], sizes = [8, 255], strides = [1, 1]} : vector<8x256xf32> to vector<8x255xf32>
    %5 = vector.extract_strided_slice %0 {offsets = [0, 0], sizes = [8, 255], strides = [1, 1]} : vector<8x256xf32> to vector<8x255xf32>
    %6 = arith.subf %4, %5 : vector<8x255xf32>
    %7 = arith.mulf %3, %3 : vector<8x240xf32>
    %8 = arith.mulf %6, %6 : vector<8x255xf32>
    %9 = tpu.iota {dimensions = array<i32: 1>} : vector<8x255xi32>
    %c16_i32 = arith.constant 16 : i32
    %c0_i32 = arith.constant 0 : i32
    %10 = arith.cmpi eq, %c16_i32, %c0_i32 : i32
    %c1_i32 = arith.constant 1 : i32
    %11 = arith.select %10, %c1_i32, %c16_i32 : i32
    %12 = vector.broadcast %11 : i32 to vector<8x255xi32>
    %13 = arith.remsi %9, %12 : vector<8x255xi32>
    %c0_i32_1 = arith.constant 0 : i32
    %14 = vector.broadcast %c0_i32_1 : i32 to vector<8x255xi32>
    %15 = arith.cmpi ne, %13, %14 : vector<8x255xi32>
    %c0_i32_2 = arith.constant 0 : i32
    %16 = vector.broadcast %c0_i32_2 : i32 to vector<8x255xi32>
    %17 = arith.cmpi slt, %13, %16 : vector<8x255xi32>
    %c0_i32_3 = arith.constant 0 : i32
    %18 = arith.cmpi slt, %11, %c0_i32_3 : i32
    %19 = vector.broadcast %18 : i1 to vector<8x255xi1>
    %20 = vector.broadcast %19 : vector<8x255xi1> to vector<8x255xi1>
    %21 = arith.xori %17, %20 : vector<8x255xi1>
    %22 = arith.andi %21, %15 : vector<8x255xi1>
    %23 = vector.broadcast %11 : i32 to vector<8x255xi32>
    %24 = arith.addi %13, %23 : vector<8x255xi32>
    %25 = arith.select %22, %24, %13 : vector<8x255xi1>, vector<8x255xi32>
    %c15_i32 = arith.constant 15 : i32
    %26 = vector.broadcast %c15_i32 : i32 to vector<8x255xi32>
    %27 = arith.cmpi ne, %25, %26 : vector<8x255xi32>
    %28 = vector.shape_cast %7 : vector<8x240xf32> to vector<1x8x240xf32>
    %cst = arith.constant dense<0.000000e+00> : vector<1xf32>
    %29 = vector.multi_reduction <add>, %28, %cst [1, 2] : vector<1x8x240xf32> to vector<1xf32>
    %30 = vector.shape_cast %29 : vector<1xf32> to vector<1x1x1xf32>
    %31 = vector.extract %30[0, 0, 0] : f32 from vector<1x1x1xf32>
    %c0_4 = arith.constant 0 : index
    %c0_5 = arith.constant 0 : index
    %32 = memref.load %arg2[%c0_4, %c0_5] : memref<1x2xf32, #tpu.memory_space<smem>>
    memref.store %31, %arg2[%c0_4, %c0_5] : memref<1x2xf32, #tpu.memory_space<smem>>
    %cst_6 = arith.constant 0.000000e+00 : f32
    %33 = vector.broadcast %cst_6 : f32 to vector<8x255xf32>
    %34 = arith.select %27, %8, %33 : vector<8x255xi1>, vector<8x255xf32>
    %35 = vector.shape_cast %34 : vector<8x255xf32> to vector<1x8x255xf32>
    %cst_7 = arith.constant dense<0.000000e+00> : vector<1xf32>
    %36 = vector.multi_reduction <add>, %35, %cst_7 [1, 2] : vector<1x8x255xf32> to vector<1xf32>
    %37 = vector.shape_cast %36 : vector<1xf32> to vector<1x1x1xf32>
    %38 = vector.extract %37[0, 0, 0] : f32 from vector<1x1x1xf32>
    %c0_8 = arith.constant 0 : index
    %c1 = arith.constant 1 : index
    %39 = memref.load %arg2[%c0_8, %c1] : memref<1x2xf32, #tpu.memory_space<smem>>
    memref.store %38, %arg2[%c0_8, %c1] : memref<1x2xf32, #tpu.memory_space<smem>>
    return
  }
  func.func @transform_0(%arg0: i32) -> (i32, i32) {
    %c0_i32 = arith.constant 0 : i32
    %c0_i32_0 = arith.constant 0 : i32
    return %arg0, %c0_i32 : i32, i32
  }
  func.func @transform_1(%arg0: i32) -> (i32, i32) {
    %c0_i32 = arith.constant 0 : i32
    %c0_i32_0 = arith.constant 0 : i32
    return %arg0, %c0_i32 : i32, i32
  }
}

</mosaic_0001>

<bundles_post_ra>
// kernel: tpu_custom_call.1
= control target key start
LH: loop header
LB: loop body
LE: loop exit
PB: predicated region body
PF: predicated region fallthrough
CT: control target
= control target key end

     0   :  { %6 = vsyncpa [#allocation3], 0  ;;  %s226_s0 = inlined_call_operand.hbm [shape: f32[8,256], index: 0, kind: input, shape index: {}]   ;;  %s227_s1 = inlined_call_operand.hbm [shape: f32[1,2], index: 1, kind: output, shape index: {}]  }
   0x1   :  { %7 = vsyncpa [#allocation4], 0  ;;  %s186_s6 = smov [#allocation2]   ;;  %s150_s10 = scalar_lea.hbm %s226_s0, 256 }
   0x2   :  { %s14_s7 = sshll.u32 %s186_s6, 4  ;;  %p151_p0 = scmp.ne.s32.totalorder %s226_s0, %s150_s10  ;;  %s15_s7 = int_to_ptr.vmem [resolvable:$true] %s14_s7 }
   0x3   :  { %p154_p1 = scmp.lt.u32.totalorder %s150_s10, %s226_s0 }
   0x5   :  { %p156_p2 = pnand %p154_p1, %p151_p0 }
   0x7   :  { %159 = shalt.err (!%p156_p2)
}
   0x8   :  { %s160_s15 = scalar_lea.vmem %s15_s7, 256  ;;  %p165_p4 = scmp.lt.s32.totalorder %s15_s7, %s15_s7 }
   0x9   :  { %p161_p3 = scmp.ne.s32.totalorder %s15_s7, %s160_s15  ;;  %p166_p5 = scmp.lt.s32.totalorder %s160_s15, %s160_s15 }
   0xb   :  { %p167_p6 = por %p166_p5, %p165_p4 }
   0xd   :  { %p168_p7 = pnand %p167_p6, %p161_p3 }
   0xf   :  { %171 = shalt.err (!%p168_p7)
}
  0x10   :  { %17 = dma.hbm_to_vmem [thread:$0]  %s226_s0, 256, %s15_s7, [#allocation3]  }
  0x11   :  { %182 = dma.done.wait [#allocation3], 256  }
  0x12   :  { %183 = vsyncadd [#allocation3], 4294967040  ;;  %v21_v0 = vld [vmem:[#allocation2] sm:$0xff]  ;;  %s187_s18 = smov 16   ;;  %s188_s19 = smov 1   ;;  %v22_v1 = vld [vmem:[#allocation2 + $0x8] sm:$0xff]  ;;  %v49_v16 = vlaneseq }
  0x13   :  { %25 = vrot.lane.b32.xlu1 %v21_v0, %s187_s18  ;;  %35 = vrot.lane.b32.xlu0 %v21_v0, %s188_s19  ;;  %vm29_vm0 = vcmask 130048   ;;  %vm39_vm1 = vcmask 7168   ;;  %s189_s0 = smov 127   ;;  %s190_s20 = smov 112   ;;  %vm107_vm3 = vcmask 1039360   ;;  %vm84_vm5 = vcmask 916480  }
  0x14   :  { %v50_v17 = vand.u32 127, %v49_v16  ;;  %s172_s25 = scalar_lea.hbm %s227_s1, 16 }
  0x15   :  { %p173_p8 = scmp.ne.s32.totalorder %s227_s1, %s172_s25  ;;  %p176_p9 = scmp.lt.u32.totalorder %s172_s25, %s227_s1 }
  0x16   :  { %v51_v18 = vadd.s32 128, %v50_v17  ;;  %v56_v20 = vand.u32 15, %v50_v17 }
  0x17   :  { %27 = vrot.lane.b32.xlu1 %v22_v1, %s187_s18  ;;  %37 = vrot.lane.b32.xlu0 %v22_v1, %s188_s19  ;;  %p178_p10 = pnand %p176_p9, %p173_p8 }
  0x18   :  { %v63_v19 = vand.u32 15, %v51_v18  ;;  %vm76_vm4 = vcmp.ne.s32.totalorder %v56_v20, 15 }
  0x1a   :  { %vm77_vm2 = vcmp.ne.s32.totalorder %v63_v19, 15 }
  0x85   :  { %v26_v2 = vpop.permute.xlu1 %25  ;;  %v36_v3 = vpop.permute.xlu0 %35 }
  0x86   :  { %v33_v4 = vsub.f32 %v21_v0, %v26_v2  ;;  %v43_v5 = vsub.f32 %v21_v0, %v36_v3 }
  0x88   :  { %v47_v6 = vmul.f32 %v43_v5, %v43_v5  ;;  %v45_v9 = vmul.f32 %v33_v4, %v33_v4 }
  0x89   :  { %v28_v7 = vpop.permute.xlu1 %27  ;;  %v38_v8 = vpop.permute.xlu0 %37 }
  0x8a   :  { %v30_v10 = vsel %vm29_vm0, %v26_v2, %v28_v7  ;;  %v40_v11 = vsel %vm39_vm1, %v36_v3, %v38_v8  ;;  %103 = vrot.lane.b32.xlu0 %v47_v6, %s189_s0 }
  0x8b   :  { %v44_v12 = vsub.f32 %v22_v1, %v40_v11  ;;  %v34_v13 = vsub.f32 %v22_v1, %v30_v10 }
  0x8d   :  { %v48_v14 = vmul.f32 %v44_v12, %v44_v12  ;;  %v46_v15 = vmul.f32 %v34_v13, %v34_v13 }
  0x8e   :  { %80 = vrot.lane.b32.xlu0 %v45_v9, %s190_s20 }
  0x8f   :  { %105 = vrot.lane.b32.xlu1 %v48_v14, %s189_s0 }
  0x93   :  { %82 = vrot.lane.b32.xlu1 %v46_v15, %s190_s20 }
  0xfc   :  { %v104_v21 = vpop.permute.xlu0 %103 }
 0x100   :  { %v81_v28 = vpop.permute.xlu0 %80 }
 0x101   :  { %v106_v22 = vpop.permute.xlu1 %105 }
 0x102   :  { %v108_v23 = vsel %vm107_vm3, %v104_v21, %v106_v22  ;;  %v112_v24 = vsel %vm77_vm2, %v106_v22, 0.0 }
 0x103   :  { %v111_v25 = vsel %vm76_vm4, %v108_v23, 0.0  ;;  %v113_v26 = vsel %vm107_vm3, %v112_v24, 0.0 }
 0x104   :  { %v114_v27 = vadd.f32 %v113_v26, %v111_v25 }
 0x105   :  { %v83_v29 = vpop.permute.xlu1 %82 }
 0x106   :  { %v85_v30 = vsel %vm84_vm5, %v81_v28, %v83_v29  ;;  %v88_v31 = vsel %vm84_vm5, %v83_v29, 0.0  ;;  %115 = vadd.xlane.f32.xlu1 %v114_v27 }
 0x107   :  { %v89_v32 = vadd.f32 %v88_v31, %v85_v30 }
 0x109   :  { %90 = vadd.xlane.f32.xlu0 %v89_v32 }
 0x193   :  { %v116_v33 = vpop.xlane.xlu1 %115 }
 0x194   :  { %v117_v34 = vrot.slane %v116_v33, 4 }
 0x196   :  { %v118_v35 = vadd.f32 %v117_v34, %v116_v33  ;;  %v91_v36 = vpop.xlane.xlu0 %90 }
 0x197   :  { %v92_v37 = vrot.slane %v91_v36, 4 }
 0x198   :  { %v119_v38 = vrot.slane %v118_v35, 2 }
 0x199   :  { %v93_v39 = vadd.f32 %v92_v37, %v91_v36 }
 0x19a   :  { %v120_v40 = vadd.f32 %v119_v38, %v118_v35 }
 0x19b   :  { %v94_v41 = vrot.slane %v93_v39, 2 }
 0x19c   :  { %v121_v43 = vrot.slane %v120_v40, 1 }
 0x19d   :  { %v95_v42 = vadd.f32 %v94_v41, %v93_v39 }
 0x19e   :  { %v122_v46 = vadd.f32 %v121_v43, %v120_v40 }
 0x19f   :  { %v96_v44 = vrot.slane %v95_v42, 1 }
 0x1a1   :  { %v97_v45 = vadd.f32 %v96_v44, %v95_v42 }
 0x1a3   :  { %140 = vpush %v97_v45 }
 0x1a4   :  { %142 = vpush %v122_v46 }
 0x1d4   :  { %s141_s21 = spop %140 }
 0x1d5   :  { %100 = sst [smem:[#allocation5]] %s141_s21  ;;  %s143_s22 = spop %142 }
 0x1d6   :  { %125 = sst [smem:[#allocation5 + $0x1]] %s143_s22 }
 0x1d7   :  { %181 = shalt.err (!%p178_p10)
}
 0x1d8   :  { %s191_s30 = smov [#allocation5]  }
 0x1d9   :  { %133 = dma.smem_to_hbm %s191_s30, 16, %s227_s1, [#allocation4]  }
 0x1da   :  { %184 = dma.done.wait [#allocation4], 16  }
 0x1db   :  { %185 = vsyncadd [#allocation4], 4294967280 }
 0x1dc   :  { %137 = sfence }
 0x1dd   :  { %138 = vsyncpa [#allocation3], 1 }
 0x1de   :  { %139 = vsyncpa [#allocation4], 1 }

</bundles_post_ra>
